<compile_context>
chip_gen: v7x
topology: tpu7x:2x2x1
jax: 0.10.0
libtpu: 0.0.40
codegen_flags: <defaults>
</compile_context>

<pallas_src>
import functools

import jax
import jax.numpy as jnp
from jax.experimental import pallas as pl
from jax.experimental.pallas import tpu as pltpu


_VMEM_LIMIT_BYTES = 32 * 1024 * 1024  # safe scoped limit on v5e/v6e/v7x


def _kd_loss_kernel(x_ref, t_ref, o_ref, *, temp_factor, batch_size):
    inv_t = 1.0 / temp_factor
    x = x_ref[...].astype(jnp.float32) * inv_t   # (tb, C) student logits / T
    y = t_ref[...].astype(jnp.float32) * inv_t   # (tb, C) teacher logits / T

    # Student log-sum-exp (for log_softmax) over the class (last) axis.
    x_max = jnp.max(x, axis=-1, keepdims=True)
    x_sh = x - x_max
    lse_x = jnp.log(jnp.sum(jnp.exp(x_sh), axis=-1, keepdims=True))

    # Teacher shifted exponentials.
    y_max = jnp.max(y, axis=-1, keepdims=True)
    y_sh = y - y_max
    ey = jnp.exp(y_sh)
    sum_ey = jnp.sum(ey, axis=-1, keepdims=True)

    # Folded per-row KL:
    #   KL_r = sum_j ey_j*(y_sh_j - x_sh_j) / sum_ey - log(sum_ey) + lse_x
    # (q==0 entries contribute 0 automatically: ey underflow -> 0 * finite.)
    s_num = jnp.sum(ey * (y_sh - x_sh), axis=-1, keepdims=True)
    kl_rows = s_num / sum_ey - jnp.log(sum_ey) + lse_x          # (tb, 1)

    scale = (temp_factor * temp_factor) / float(batch_size)
    partial = jnp.sum(kl_rows) * scale                          # scalar

    # Per-tile partial output: full (1, 8, 128) block, unmasked store.
    o_ref[...] = jnp.broadcast_to(partial, o_ref.shape)


def _pick_batch_tile(B, C, itemsize, vmem_limit_bytes=_VMEM_LIMIT_BYTES,
                     max_tile=1024):
    """Pick (batch_tile, pad_rows).

    The tile (a) respects sublane packing for the input dtype, (b) keeps the
    double-buffered input blocks plus in-kernel f32 temporaries inside VMEM,
    and (c) prefers an exact divisor of B; otherwise the batch is zero-padded
    (padded rows contribute exactly 0 to the loss).
    """
    sublane = {4: 8, 2: 16, 1: 32}.get(itemsize, 8)
    # Per tile row: 2 inputs x 2 pipeline buffers at the input dtype, plus
    # roughly 6 live (tile, C) f32 temporaries inside the kernel body.
    per_row = C * (4 * itemsize + 6 * 4)
    budget = int(vmem_limit_bytes * 0.75)
    cap = max(sublane, budget // per_row)
    cap = min(cap, max_tile)
    cap = max((cap // sublane) * sublane, sublane)

    if B <= cap:
        # Single tile: block dim == full array dim is always legal.
        return B, 0

    # Prefer an exact divisor of B that is still "large" (>= cap/2): no pad.
    t = cap
    while t >= max(sublane, cap // 2):
        if B % t == 0:
            return t, 0
        t -= sublane

    # Otherwise keep the big tile and zero-pad the batch.
    pad = (-B) % cap
    return cap, pad
    # TODO(synk): for vocab-scale C where even an 8-row block exceeds VMEM,
    # add a class-axis grid with online-LSE accumulation.


def kd_loss(input_logits, target_logits, temp_factor, *, max_batch_tile=1024):
    """Pallas TPU implementation of KDLoss.forward. Returns a scalar f32."""
    assert input_logits.shape == target_logits.shape
    B, C = input_logits.shape
    itemsize = jnp.dtype(input_logits.dtype).itemsize
    batch_tile, pad = _pick_batch_tile(B, C, itemsize, max_tile=max_batch_tile)

    if pad:
        # All-zero student/teacher rows have identical distributions -> KL 0.
        input_logits = jnp.pad(input_logits, ((0, pad), (0, 0)))
        target_logits = jnp.pad(target_logits, ((0, pad), (0, 0)))

    num_tiles = pl.cdiv(B + pad, batch_tile)

    kernel = functools.partial(
        _kd_loss_kernel, temp_factor=float(temp_factor), batch_size=B
    )

    partials = pl.pallas_call(
        kernel,
        out_shape=jax.ShapeDtypeStruct((num_tiles, 8, 128), jnp.float32),
        grid_spec=pltpu.PrefetchScalarGridSpec(
            num_scalar_prefetch=0,
            grid=(num_tiles,),
            in_specs=[
                pl.BlockSpec((batch_tile, C), lambda i: (i, 0)),
                pl.BlockSpec((batch_tile, C), lambda i: (i, 0)),
            ],
            out_specs=pl.BlockSpec((1, 8, 128), lambda i: (i, 0, 0)),
        ),
        compiler_params=pltpu.CompilerParams(
            # Independent per-tile partial outputs -> safe to shard across
            # TensorCores (2x on v7x); harmless on v5e/v6e.
            dimension_semantics=("parallel",),
            vmem_limit_bytes=_VMEM_LIMIT_BYTES,
        ),
    )(input_logits, target_logits)

    # Each tile's partial is broadcast across its (8,128) block; take one
    # element per tile and reduce (tiny).
    return jnp.sum(partials[:, 0, 0])


def kd_loss_reference(input_logits, target_logits, temp_factor):
    """Pure-JAX reference for correctness checking."""
    B = input_logits.shape[0]
    log_p = jax.nn.log_softmax(input_logits / temp_factor, axis=1)
    log_q = jax.nn.log_softmax(target_logits / temp_factor, axis=1)
    q = jnp.exp(log_q)
    kl = jnp.sum(q * (log_q - log_p))
    return kl * temp_factor ** 2 / B


if __name__ == "__main__":
    temp_factor = 4.0
    key = jax.random.PRNGKey(0)

    # Case 1: small synthetic shapes, tile capped at 16 rows to exercise the
    # multi-tile (per-tile-partial + wrapper-reduce) path.
    B, C = 64, 256
    k1, k2 = jax.random.split(key)
    student = jax.random.normal(k1, (B, C), dtype=jnp.float32) * 2.0
    teacher = jax.random.normal(k2, (B, C), dtype=jnp.float32) * 2.0
    loss = jax.block_until_ready(
        kd_loss(student, teacher, temp_factor, max_batch_tile=16))
    ref = kd_loss_reference(student, teacher, temp_factor)
    assert jnp.allclose(loss, ref, rtol=1e-5, atol=1e-4), (loss, ref)

    # Case 2: batch not divisible by the tile -> exercises the zero-pad path.
    B2 = 50
    k3, k4 = jax.random.split(k2)
    student2 = jax.random.normal(k3, (B2, C), dtype=jnp.float32) * 2.0
    teacher2 = jax.random.normal(k4, (B2, C), dtype=jnp.float32) * 2.0
    loss2 = jax.block_until_ready(
        kd_loss(student2, teacher2, temp_factor, max_batch_tile=16))
    ref2 = kd_loss_reference(student2, teacher2, temp_factor)
    assert jnp.allclose(loss2, ref2, rtol=1e-5, atol=1e-4), (loss2, ref2)

    print("KERNEL_OK")
</pallas_src>

<mosaic_0001>
module attributes {stable_mosaic.version = 11 : i64} {
  func.func @_kd_loss_kernel(%arg0: i32, %arg1: memref<16x256xf32, #tpu.memory_space<vmem>>, %arg2: memref<16x256xf32, #tpu.memory_space<vmem>>, %arg3: memref<1x8x128xf32, #tpu.memory_space<vmem>>) attributes {dimension_semantics = [#tpu.dimension_semantics<parallel>], iteration_bounds = array<i64: 4>, scalar_prefetch = 0 : i64, scratch_operands = 0 : i64, tpu.core_type = #tpu.core_type<tc>, window_params = [{transform_indices = @transform_0, window_bounds = array<i64: 16, 256>}, {transform_indices = @transform_1, window_bounds = array<i64: 16, 256>}, {transform_indices = @transform_2, window_bounds = array<i64: 1, 8, 128>}]} {
    %c0 = arith.constant 0 : index
    %c0_0 = arith.constant 0 : index
    %0 = vector.load %arg1[%c0, %c0_0] : memref<16x256xf32, #tpu.memory_space<vmem>>, vector<16x256xf32>
    %cst = arith.constant 2.500000e-01 : f32
    %1 = vector.broadcast %cst : f32 to vector<16x256xf32>
    %2 = arith.mulf %0, %1 : vector<16x256xf32>
    %c0_1 = arith.constant 0 : index
    %c0_2 = arith.constant 0 : index
    %3 = vector.load %arg2[%c0_1, %c0_2] : memref<16x256xf32, #tpu.memory_space<vmem>>, vector<16x256xf32>
    %cst_3 = arith.constant 2.500000e-01 : f32
    %4 = vector.broadcast %cst_3 : f32 to vector<16x256xf32>
    %5 = arith.mulf %3, %4 : vector<16x256xf32>
    %cst_4 = arith.constant dense<0xFF800000> : vector<16xf32>
    %6 = vector.multi_reduction <maximumf>, %2, %cst_4 [1] : vector<16x256xf32> to vector<16xf32>
    %7 = vector.shape_cast %6 : vector<16xf32> to vector<16x1xf32>
    %8 = vector.broadcast %7 : vector<16x1xf32> to vector<16x256xf32>
    %9 = arith.subf %2, %8 : vector<16x256xf32>
    %10 = math.exp %9 : vector<16x256xf32>
    %cst_5 = arith.constant dense<0.000000e+00> : vector<16xf32>
    %11 = vector.multi_reduction <add>, %10, %cst_5 [1] : vector<16x256xf32> to vector<16xf32>
    %12 = vector.shape_cast %11 : vector<16xf32> to vector<16x1xf32>
    %13 = math.log %12 : vector<16x1xf32>
    %cst_6 = arith.constant dense<0xFF800000> : vector<16xf32>
    %14 = vector.multi_reduction <maximumf>, %5, %cst_6 [1] : vector<16x256xf32> to vector<16xf32>
    %15 = vector.shape_cast %14 : vector<16xf32> to vector<16x1xf32>
    %16 = vector.broadcast %15 : vector<16x1xf32> to vector<16x256xf32>
    %17 = arith.subf %5, %16 : vector<16x256xf32>
    %18 = math.exp %17 : vector<16x256xf32>
    %cst_7 = arith.constant dense<0.000000e+00> : vector<16xf32>
    %19 = vector.multi_reduction <add>, %18, %cst_7 [1] : vector<16x256xf32> to vector<16xf32>
    %20 = vector.shape_cast %19 : vector<16xf32> to vector<16x1xf32>
    %21 = arith.subf %17, %9 : vector<16x256xf32>
    %22 = arith.mulf %18, %21 : vector<16x256xf32>
    %cst_8 = arith.constant dense<0.000000e+00> : vector<16xf32>
    %23 = vector.multi_reduction <add>, %22, %cst_8 [1] : vector<16x256xf32> to vector<16xf32>
    %24 = vector.shape_cast %23 : vector<16xf32> to vector<16x1xf32>
    %25 = arith.divf %24, %20 : vector<16x1xf32>
    %26 = math.log %20 : vector<16x1xf32>
    %27 = arith.subf %25, %26 : vector<16x1xf32>
    %28 = arith.addf %27, %13 : vector<16x1xf32>
    %29 = vector.shape_cast %28 : vector<16x1xf32> to vector<1x16x1xf32>
    %cst_9 = arith.constant dense<0.000000e+00> : vector<1xf32>
    %30 = vector.multi_reduction <add>, %29, %cst_9 [1, 2] : vector<1x16x1xf32> to vector<1xf32>
    %31 = vector.shape_cast %30 : vector<1xf32> to vector<1x1x1xf32>
    %32 = vector.extract %31[0, 0, 0] : f32 from vector<1x1x1xf32>
    %cst_10 = arith.constant 2.500000e-01 : f32
    %33 = arith.mulf %32, %cst_10 : f32
    %34 = vector.broadcast %33 : f32 to vector<1x8x128xf32>
    %c0_11 = arith.constant 0 : index
    %c0_12 = arith.constant 0 : index
    %c0_13 = arith.constant 0 : index
    %35 = vector.load %arg3[%c0_11, %c0_12, %c0_13] : memref<1x8x128xf32, #tpu.memory_space<vmem>>, vector<1x8x128xf32>
    tpu.vector_store %arg3[%c0_11, %c0_12, %c0_13], %34 {strides = array<i32>} : memref<1x8x128xf32, #tpu.memory_space<vmem>>, vector<1x8x128xf32>,
    return
  }
  func.func @transform_0(%arg0: i32) -> (i32, i32) {
    %c0_i32 = arith.constant 0 : i32
    %c0_i32_0 = arith.constant 0 : i32
    return %arg0, %c0_i32 : i32, i32
  }
  func.func @transform_1(%arg0: i32) -> (i32, i32) {
    %c0_i32 = arith.constant 0 : i32
    %c0_i32_0 = arith.constant 0 : i32
    return %arg0, %c0_i32 : i32, i32
  }
  func.func @transform_2(%arg0: i32) -> (i32, i32, i32) {
    %c0_i32 = arith.constant 0 : i32
    %c0_i32_0 = arith.constant 0 : i32
    %c0_i32_1 = arith.constant 0 : i32
    return %arg0, %c0_i32, %c0_i32_0 : i32, i32, i32
  }
}

</mosaic_0001>

<bundles_post_ra>
// kernel: tpu_custom_call.1
= control target key start
LH: loop header
LB: loop body
LE: loop exit
PB: predicated region body
PF: predicated region fallthrough
CT: control target
= control target key end

     0   :  { %7 = vsyncpa [#allocation3], 0  ;;  %s901_s0 = inlined_call_operand.hbm [shape: f32[64,256], index: 0, kind: input, shape index: {}]   ;;  %s902_s1 = inlined_call_operand.hbm [shape: f32[64,256], index: 1, kind: input, shape index: {}]   ;;  %s903_s2 = inlined_call_operand.hbm [shape: f32[4,8,128], index: 2, kind: output, shape index: {}]  }
   0x1   :  { %9 = vsyncpa [#allocation3 + $0x1], 0 }
   0x2   :  { %10 = vsyncpa [#allocation6], 0 }
   0x3   :  { %12 = vsyncpa [#allocation6 + $0x1], 0 }
   0x4   :  { %13 = vsyncpa [#allocation4], 0 }
   0x5   :  { %15 = vsyncpa [#allocation4 + $0x1], 0  ;;  %s681_s9 = smov 0   ;;  %s683_s10 = smov 0  }
   0x6   :  { %s685_s11 = smov 0   ;;  %s687_s12 = smov 0  }
   0x7 LB: > { %s702_s13 = sadd.s32 4294967295, %s659_s12   ;;  %s423_s14 = sadd.s32 4294967294, %s659_s12   ;;  %s659_s12 = sphi %s687_s12, %s918_s12   ;;  %s655_s11 = sphi %s685_s11, %s917_s11   ;;  %s651_s10 = sphi %s683_s10, %s916_s10   ;;  %s647_s9 = sphi %s681_s9, %s915_s9  }
   0x8   : > { %s706_s15 = sadd.s32 1, %s659_s12   ;;  %s28_s16 = sadd.s32 1, %s655_s11 }
   0x9   : > { %s25_s17 = ssub.s32 %s659_s12, %s706_s15  ;;  %p35_p0 = scmp.ne.s32.totalorder %s655_s11, %s651_s10 }
   0xa   : > { %p26_p1 = scmp.eq.s32.totalorder %s25_s17, 0  ;;  %p36_p2 = scmp.eq.s32.totalorder %s659_s12, 0 }
   0xb   : > { %p41_p3 = scmp.ne.s32.totalorder %s651_s10, %s647_s9  ;;  %p42_p4 = scmp.eq.s32.totalorder %s702_s13, 0 }
   0xc   : > { %s718_s18 = scalar_select %p26_p1, %s655_s11, %s28_s16  }
   0xd   : > { %p720_p5 = por %p36_p2, %p35_p0  ;;  %p724_p6 = por %p42_p4, %p41_p3 }
   0xe   : > { %p91_p7 = scmp.eq.s32.totalorder %s702_s13, 3  ;;  %p97_p8 = scmp.eq.s32.totalorder %s423_s14, 3 }
   0xf   : > { %s907_s20 = scalar_select %p724_p6, 1, 0 }
  0x10   : > { %p465_p9 = scmp.lt.s32.totalorder %s659_s12, 4  ;;  %p730_p10 = por %p91_p7, %p35_p0 }
  0x11   : > { %p734_p11 = por %p97_p8, %p41_p3  ;;  %s739_s23 = sand.u32 1, %s655_s11  }
  0x12   : > { %s908_s21 = scalar_select %p730_p10, 1, 0 }
  0x13   : > { %s909_s22 = scalar_select %p734_p11, 1, 0 }
  0x14   : > { %s443_s24 = sshll.u32 %s659_s12, 9  ;;  %s426_s25 = sshll.u32 %s739_s23, 5 }
  0x15   : > { %s748_s28 = scalar_lea.hbm %s901_s0, %s443_s24  ;;  %s121_s29 = scalar_lea.vmem [#allocation2], %s426_s25 }
  0x16   : > { %s129_s30 = sshll.u32 %s121_s29, 4  ;;  %p754_p12 = pnand %p465_p9, %p720_p5  ;;  %s758_s30 = int_to_ptr.vmem [resolvable:$true] %s129_s30 }
  0x17   : > { %s118_s4 = scalar_lea.sflag [#allocation3], %s739_s23  ;;  %s529_s5 = scalar_lea.hbm %s748_s28, 512 }
  0x18   : > { %p530_p13 = scmp.ne.s32.totalorder %s748_s28, %s529_s5  ;;  %p531_p0 = pneg %p754_p12 }
  0x19   : > { %s534_s8 = scalar_lea.hbm %s901_s0, 2048  ;;  %p535_p3 = scmp.lt.u32.totalorder %s748_s28, %s901_s0 }
  0x1a   : > { %p532_p1 = pnand %p531_p0, %p530_p13  ;;  %p536_p4 = scmp.lt.u32.totalorder %s534_s8, %s529_s5 }
  0x1b   : > { %p538_p7 = scmp.lt.u32.totalorder %s529_s5, %s748_s28 }
  0x1c   : > { %p533_p2 = pneg %p532_p1  ;;  %p537_p5 = por %p536_p4, %p535_p3 }
  0x1e   : > { %p539_p8 = por %p538_p7, %p537_p5 }
  0x20   : > { %p540_p9 = pnand %p539_p8, %p533_p2 }
  0x22   : > { %543 = shalt.err (!%p540_p9)
}
  0x23   : > { %s544_s17 = scalar_lea.vmem %s758_s30, 512  ;;  %s661_s19 = smov [#allocation2]  }
  0x24   : > { %p545_p13 = scmp.ne.s32.totalorder %s758_s30, %s544_s17  ;;  %s549_s26 = sshll.u32 %s661_s19, 4  ;;  %s550_s26 = int_to_ptr.vmem [resolvable:$false] %s549_s26 }
  0x25   : > { %s551_s27 = scalar_lea.vmem %s550_s26, 1024  ;;  %p552_p10 = scmp.lt.s32.totalorder %s758_s30, %s550_s26 }
  0x26   : > { %p547_p1 = pnand %p545_p13, %p531_p0  ;;  %p553_p3 = scmp.lt.s32.totalorder %s551_s27, %s544_s17 }
  0x28   : > { %p548_p11 = pneg %p547_p1  ;;  %p554_p4 = por %p553_p3, %p552_p10 }
  0x2a   : > { %p555_p5 = pnand %p554_p4, %p548_p11 }
  0x2c   : > { %558 = shalt.err (!%p555_p5)
}
  0x2d   : > { %s662_s29 = smov 256   ;;  %s663_s5 = smov 16  }
  0x2e   : > { %457 = dma.hbm_to_vmem [thread:$0]  (!%p754_p12), %s748_s28, 512, %s758_s30, %s118_s4, %s662_s29, %s662_s29, %s663_s5  }
  0x2f   : > { %p434_p10 = scmp.ge.s32.totalorder %s659_s12, 1  ;;  %p159_p11 = scmp.lt.s32.totalorder %s659_s12, 5 }
  0x30   : > { %s802_s14 = scalar_lea.hbm %s902_s1, %s443_s24  ;;  %s143_s16 = scalar_lea.vmem [#allocation5], %s426_s25 }
  0x31   : > { %p793_p2 = pnand %p434_p10, %p159_p11  ;;  %s151_s17 = sshll.u32 %s143_s16, 4  ;;  %s806_s17 = int_to_ptr.vmem [resolvable:$true] %s151_s17 }
  0x32   : > { %s140_s28 = scalar_lea.sflag [#allocation6], %s739_s23  ;;  %s559_s30 = scalar_lea.hbm %s802_s14, 512 }
  0x33   : > { %p560_p7 = scmp.ne.s32.totalorder %s802_s14, %s559_s30  ;;  %s564_s24 = scalar_lea.hbm %s902_s1, 2048 }
  0x34   : > { %p565_p13 = scmp.lt.u32.totalorder %s802_s14, %s902_s1  ;;  %p566_p1 = scmp.lt.u32.totalorder %s564_s24, %s559_s30 }
  0x35   : > { %p562_p8 = pnand %p560_p7, %p531_p0  ;;  %p568_p4 = scmp.lt.u32.totalorder %s559_s30, %s802_s14 }
  0x36   : > { %p567_p3 = por %p566_p1, %p565_p13 }
  0x37   : > { %p563_p9 = pneg %p562_p8 }
  0x38   : > { %p569_p5 = por %p568_p4, %p567_p3 }
  0x3a   : > { %p570_p10 = pnand %p569_p5, %p563_p9 }
  0x3c   : > { %573 = shalt.err (!%p570_p10)
}
  0x3d   : > { %s574_s25 = scalar_lea.vmem %s806_s17, 512  ;;  %s664_s7 = smov [#allocation5]  }
  0x3e   : > { %p575_p11 = scmp.ne.s32.totalorder %s806_s17, %s574_s25  ;;  %s579_s8 = sshll.u32 %s664_s7, 4  ;;  %s580_s8 = int_to_ptr.vmem [resolvable:$false] %s579_s8 }
  0x3f   : > { %s581_s16 = scalar_lea.vmem %s580_s8, 1024  ;;  %p582_p6 = scmp.lt.s32.totalorder %s806_s17, %s580_s8 }
  0x40   : > { %p577_p7 = pnand %p575_p11, %p531_p0  ;;  %p583_p13 = scmp.lt.s32.totalorder %s581_s16, %s574_s25 }
  0x42   : > { %p578_p8 = pneg %p577_p7  ;;  %p584_p1 = por %p583_p13, %p582_p6 }
  0x44   : > { %p585_p3 = pnand %p584_p1, %p578_p8 }
  0x46   : > { %588 = shalt.err (!%p585_p3)
}
  0x47   : > { %460 = dma.hbm_to_vmem [thread:$0]  (!%p754_p12), %s802_s14, 512, %s806_s17, %s140_s28, %s662_s29, %s662_s29, %s663_s5  }
  0x48   : > { %163 = sbr.rel (%p793_p2) target bundleno = 636 (0x27c), region = 28  ;;  %s840_s30 = sand.u32 (!%p793_p2), 1, %s651_s10  }
  0x49   : > { %s435_s4 = sshll.u32 (!%p793_p2), %s840_s30, 5  ;;  %s166_s19 = scalar_lea.sflag (!%p793_p2), [#allocation3], %s840_s30 }
  0x4a   : > { %s169_s3 = scalar_lea.vmem (!%p793_p2), [#allocation2], %s435_s4  ;;  %p912_p6 = scmp.ne.s32.totalorder (!%p793_p2), %s907_s20, 0 }
  0x4f   : > { %634 = dma.done.wait (%p912_p6), %s166_s19, 512  }
  0x50   : > { %636 = vsyncadd (%p912_p6), %s166_s19, 4294966784  ;;  %s175_s23 = scalar_lea.sflag [#allocation6], %s840_s30  ;;  %s178_s29 = scalar_lea.vmem [#allocation5], %s435_s4 }
  0x51   : > { %638 = dma.done.wait (%p912_p6), %s175_s23, 512  }
  0x52   : > { %640 = vsyncadd (%p912_p6), %s175_s23, 4294966784  ;;  %v214_v0 = vld [vmem:[%s178_s29] sm:$0xff]  ;;  %v215_v1 = vld [vmem:[%s178_s29 + $0x8] sm:$0xff]  ;;  %vm300_vm0 = vcmask 7168   ;;  %s437_s20 = sshll.u32 %s840_s30, 3  ;;  %s439_s14 = sshll.u32 %s702_s13, 7 }
  0x53   : > { %v206_v2 = vld [vmem:[%s169_s3] sm:$0xff]  ;;  %v218_v3 = vmul.f32 0.25, %v214_v0  ;;  %v219_v4 = vmul.f32 0.25, %v215_v1  ;;  %v207_v5 = vld [vmem:[%s169_s3 + $0x8] sm:$0xff]  ;;  %v216_v7 = vld [vmem:[%s178_s29 + $0x10] sm:$0xff]  ;;  %s203_s5 = scalar_lea.vmem [#allocation7], %s437_s20  ;;  %s858_s27 = scalar_lea.hbm %s903_s2, %s439_s14 }
  0x54   : > { %v210_v6 = vmul.f32 0.25, %v206_v2  ;;  %v217_v8 = vld [vmem:[%s178_s29 + $0x18] sm:$0xff]  ;;  %v211_v9 = vmul.f32 0.25, %v207_v5  ;;  %v220_v10 = vmul.f32 0.25, %v216_v7  ;;  %v208_v12 = vld [vmem:[%s169_s3 + $0x10] sm:$0xff]  ;;  %s330_s6 = sshll.u32 %s203_s5, 4  ;;  %s860_s6 = int_to_ptr.vmem [resolvable:$true] %s330_s6 }
  0x55   : > { %v221_v11 = vmul.f32 0.25, %v217_v8  ;;  %v209_v13 = vld [vmem:[%s169_s3 + $0x18] sm:$0xff]  ;;  %v250_v14 = vmax.f32 %v218_v3, %v219_v4  ;;  %v212_v15 = vmul.f32 0.25, %v208_v12  ;;  %s317_s25 = scalar_lea.sflag [#allocation4], %s840_s30  ;;  %s589_s7 = scalar_lea.vmem %s860_s6, 128 }
  0x56   : > { %v213_v16 = vmul.f32 0.25, %v209_v13  ;;  %v222_v17 = vmax.f32 %v210_v6, %v211_v9  ;;  %p590_p12 = scmp.ne.s32.totalorder %s860_s6, %s589_s7  ;;  %p913_p0 = scmp.ne.s32.totalorder %s908_s21, 0 }
  0x57   : > { %251 = vmax.xlane.f32.xlu0 %v250_v14  ;;  %v253_v18 = vmax.f32 %v220_v10, %v221_v11  ;;  %s665_s13 = smov [#allocation7]  }
  0x58   : > { %223 = vmax.xlane.f32.xlu1 %v222_v17  ;;  %v225_v19 = vmax.f32 %v212_v15, %v213_v16  ;;  %p591_p2 = pnand %p590_p12, %p913_p0  ;;  %s593_s8 = sshll.u32 %s665_s13, 4  ;;  %s594_s8 = int_to_ptr.vmem [resolvable:$false] %s593_s8 }
  0x59   : > { %s595_s16 = scalar_lea.vmem %s594_s8, 256  ;;  %p596_p4 = scmp.lt.s32.totalorder %s860_s6, %s594_s8 }
  0x5a   : > { %p592_p9 = pneg %p591_p2  ;;  %p597_p5 = scmp.lt.s32.totalorder %s595_s16, %s589_s7 }
  0x5b   : > { %254 = vmax.xlane.f32.xlu0 %v253_v18 }
  0x5c   : > { %226 = vmax.xlane.f32.xlu1 %v225_v19  ;;  %p598_p10 = por %p597_p5, %p596_p4 }
  0x5e   : > { %p599_p11 = pnand %p598_p10, %p592_p9 }
  0xe4   : > { %v252_v20 = vpop.xlane.xlu0 %251 }
  0xe5   : > { %v256_v21 = vsub.f32 %v218_v3, %v252_v20  ;;  %v257_v22 = vsub.f32 %v219_v4, %v252_v20  ;;  %v224_v23 = vpop.xlane.xlu1 %223 }
  0xe6   : > { %v228_v24 = vsub.f32 %v210_v6, %v224_v23  ;;  %v229_v25 = vsub.f32 %v211_v9, %v224_v23 }
  0xe7   : > { %v260_v26 = vmul.f32 1.442695, %v256_v21  ;;  %v262_v27 = vmul.f32 1.442695, %v257_v22 }
  0xe8   : > { %v232_v28 = vmul.f32 1.442695, %v228_v24  ;;  %v234_v29 = vmul.f32 1.442695, %v229_v25  ;;  %v255_v30 = vpop.xlane.xlu0 %254  ;;  %v274_v46 = vsub.f32 %v256_v21, %v228_v24  ;;  %v275_v47 = vsub.f32 %v257_v22, %v229_v25 }
  0xe9   : > { %501 = vpow2.f32 %v260_v26  ;;  %v258_v31 = vsub.f32 %v220_v10, %v255_v30  ;;  %v259_v32 = vsub.f32 %v221_v11, %v255_v30  ;;  %v227_v33 = vpop.xlane.xlu1 %226 }
  0xea   : > { %503 = vpow2.f32 %v262_v27  ;;  %v230_v34 = vsub.f32 %v212_v15, %v227_v33  ;;  %v231_v35 = vsub.f32 %v213_v16, %v227_v33 }
  0xeb   : > { %505 = vpow2.f32 %v232_v28  ;;  %v264_v36 = vmul.f32 1.442695, %v258_v31  ;;  %v266_v37 = vmul.f32 1.442695, %v259_v32 }
  0xec   : > { %507 = vpow2.f32 %v234_v29  ;;  %v236_v38 = vmul.f32 1.442695, %v230_v34  ;;  %v238_v39 = vmul.f32 1.442695, %v231_v35  ;;  %v276_v55 = vsub.f32 %v258_v31, %v230_v34 }
  0xed   : > { %509 = vpow2.f32 %v264_v36  ;;  %v277_v56 = vsub.f32 %v259_v32, %v231_v35 }
  0xee   : > { %511 = vpow2.f32 %v266_v37 }
  0xef   : > { %513 = vpow2.f32 %v236_v38 }
  0xf0   : > { %515 = vpow2.f32 %v238_v39 }
  0xf3   : > { %v502_v40 = vpop.eup %501 }
  0xf4   : > { %v504_v41 = vpop.eup %503  ;;  %v278_v52 = vmul.f32 %v502_v40, %v274_v46 }
  0xf5   : > { %v506_v42 = vpop.eup %505  ;;  %v268_v43 = vadd.f32 %v504_v41, %v502_v40  ;;  %v279_v53 = vmul.f32 %v504_v41, %v275_v47 }
  0xf6   : > { %v508_v44 = vpop.eup %507 }
  0xf7   : > { %v510_v45 = vpop.eup %509  ;;  %269 = vadd.xlane.f32.xlu0 %v268_v43  ;;  %v240_v48 = vadd.f32 %v508_v44, %v506_v42  ;;  %v282_v58 = vadd.f32 %v279_v53, %v278_v52 }
  0xf8   : > { %v512_v49 = vpop.eup %511  ;;  %v280_v59 = vmul.f32 %v510_v45, %v276_v55 }
  0xf9   : > { %v514_v50 = vpop.eup %513  ;;  %v271_v51 = vadd.f32 %v512_v49, %v510_v45  ;;  %v281_v60 = vmul.f32 %v512_v49, %v277_v56 }
  0xfa   : > { %v516_v54 = vpop.eup %515 }
  0xfb   : > { %272 = vadd.xlane.f32.xlu1 %v271_v51  ;;  %241 = vadd.xlane.f32.xlu0 %v240_v48  ;;  %v243_v57 = vadd.f32 %v516_v54, %v514_v50  ;;  %v285_v61 = vadd.f32 %v281_v60, %v280_v59 }
  0xff   : > { %283 = vadd.xlane.f32.xlu0 %v282_v58  ;;  %244 = vadd.xlane.f32.xlu1 %v243_v57 }
 0x103   : > { %286 = vadd.xlane.f32.xlu1 %v285_v61 }
 0x184   : > { %v270_v62 = vpop.xlane.xlu0 %269 }
 0x185   : > { %517 = vrcp.f32 %v270_v62 }
 0x186   : > { %519 = vlog2.f32 %v270_v62 }
 0x188   : > { %v242_v63 = vpop.xlane.xlu0 %241  ;;  %v273_v0 = vpop.xlane.xlu1 %272 }
 0x189   : > { %521 = vlog2.f32 %v242_v63 }
 0x18a   : > { %523 = vrcp.f32 %v273_v0 }
 0x18b   : > { %525 = vlog2.f32 %v273_v0 }
 0x18c   : > { %v245_v1 = vpop.xlane.xlu1 %244  ;;  %v284_v4 = vpop.xlane.xlu0 %283 }
 0x18d   : > { %527 = vlog2.f32 %v245_v1 }
 0x18f   : > { %v518_v2 = vpop.eup %517 }
 0x190   : > { %v520_v3 = vpop.eup %519  ;;  %v289_v6 = vmul.f32 %v518_v2, %v284_v4  ;;  %v287_v10 = vpop.xlane.xlu1 %286 }
 0x191   : > { %v293_v5 = vmul.f32 0.6931472, %v520_v3 }
 0x193   : > { %v522_v7 = vpop.eup %521  ;;  %v296_v13 = vsub.f32 %v289_v6, %v293_v5 }
 0x194   : > { %v524_v8 = vpop.eup %523  ;;  %v247_v9 = vmul.f32 0.6931472, %v522_v7 }
 0x195   : > { %v526_v11 = vpop.eup %525  ;;  %v291_v12 = vmul.f32 %v524_v8, %v287_v10 }
 0x196   : > { %v295_v14 = vmul.f32 0.6931472, %v526_v11  ;;  %v298_v18 = vadd.f32 %v296_v13, %v247_v9 }
 0x197   : > { %v528_v15 = vpop.eup %527 }
 0x198   : > { %v249_v16 = vmul.f32 0.6931472, %v528_v15  ;;  %v297_v17 = vsub.f32 %v291_v12, %v295_v14  ;;  %v301_v20 = vsel %vm300_vm0, %v298_v18, 0.0 }
 0x19a   : > { %v299_v19 = vadd.f32 %v297_v17, %v249_v16 }
 0x19c   : > { %v302_v21 = vsel %vm300_vm0, %v299_v19, 0.0 }
 0x19d   : > { %v303_v22 = vadd.f32 %v302_v21, %v301_v20 }
 0x19f   : > { %304 = vadd.xlane.f32.xlu0 %v303_v22 }
 0x22c   : > { %v305_v23 = vpop.xlane.xlu0 %304 }
 0x22d   : > { %v306_v24 = vrot.slane %v305_v23, 4 }
 0x22f   : > { %v307_v25 = vadd.f32 %v306_v24, %v305_v23 }
 0x231   : > { %v308_v26 = vrot.slane %v307_v25, 2 }
 0x233   : > { %v309_v27 = vadd.f32 %v308_v26, %v307_v25 }
 0x235   : > { %v310_v28 = vrot.slane %v309_v27, 1 }
 0x237   : > { %v311_v29 = vadd.f32 %v310_v28, %v309_v27 }
 0x239   : > { %446 = vpush %v311_v29 }
 0x26a   : > { %s447_s17 = spop %446 }
 0x26b   : > { %s313_s28 = smul.f32 0.25, %s447_s17 }
 0x26d   : > { %v314_v30 = vstv %s313_s28 }
 0x26e   : > { %315 = vst [vmem:[%s203_s5] sm:$0xff] %v314_v30 }
 0x26f   : > { %602 = shalt.err (!%p599_p11)
}
 0x270   : > { %s603_s30 = scalar_lea.hbm %s858_s27, 128  ;;  %s607_s3 = scalar_lea.hbm %s903_s2, 512 }
 0x271   : > { %p604_p7 = scmp.ne.s32.totalorder %s858_s27, %s603_s30  ;;  %p608_p1 = scmp.lt.u32.totalorder %s858_s27, %s903_s2 }
 0x272   : > { %p609_p3 = scmp.lt.u32.totalorder %s607_s3, %s603_s30  ;;  %p611_p12 = scmp.lt.u32.totalorder %s603_s30, %s858_s27 }
 0x273   : > { %p605_p8 = pnand %p604_p7, %p913_p0 }
 0x274   : > { %p610_p6 = por %p609_p3, %p608_p1 }
 0x275   : > { %p606_p13 = pneg %p605_p8 }
 0x276   : > { %p612_p2 = por %p611_p12, %p610_p6 }
 0x278   : > { %p613_p9 = pnand %p612_p2, %p606_p13 }
 0x27a   : > { %616 = shalt.err (!%p613_p9)
}
 0x27b   : > { %452 = dma.vmem_to_hbm [thread:$0]  (%p913_p0), %s860_s6, 128, %s858_s27, %s317_s25  }
 0x27c PF: > { %p466_p4 = scmp.ge.s32.totalorder %s659_s12, 2  ;;  %s342_s20 = sand.u32 1, %s647_s9  }
 0x27d   : > { %p914_p5 = scmp.ne.s32.totalorder %s909_s22, 0  ;;  %s343_s5 = scalar_lea.sflag [#allocation4], %s342_s20 }
 0x27f   : > { %p462_p10 = pnand %p466_p4, %p914_p5 }
 0x281   : > { %642 = dma.done.wait (!%p462_p10), %s343_s5, 128  }
 0x282   : > { %644 = vsyncadd (!%p462_p10), %s343_s5, 4294967168  ;;  %p18_p11 = scmp.ge.s32.totalorder %s706_s15, 6   ;;  %s915_s9 = smov %s651_s10 }
 0x283   : > { %s916_s10 = smov %s655_s11  ;;  %s917_s11 = smov %s718_s18 }
 0x284   : > { %s918_s12 = smov %s706_s15  ;;  %20 = sbr.rel (!%p18_p11) target bundleno = 7 (0x7), region = 86 }
 0x28b   :  { %348 = vsyncpa [#allocation3], 1 }
 0x28c   :  { %350 = vsyncpa [#allocation3 + $0x1], 1 }
 0x28d   :  { %351 = vsyncpa [#allocation6], 1 }
 0x28e   :  { %353 = vsyncpa [#allocation6 + $0x1], 1 }
 0x28f   :  { %354 = vsyncpa [#allocation4], 1 }
 0x290   :  { %356 = vsyncpa [#allocation4 + $0x1], 1 }

</bundles_post_ra>
